<compile_context>
chip_gen: v5e
topology: v5e:2x2
jax: 0.10.0
libtpu: 0.0.40
codegen_flags: <defaults>
</compile_context>

<pallas_src>
import jax
import jax.numpy as jnp
from jax import lax
from jax.experimental import pallas as pl
from jax.experimental.pallas import tpu as pltpu


def _round_up(x, m):
    return ((x + m - 1) // m) * m


def _pick_tm(n, cap):
    """Row tile: multiple of 8, <= cap, minimizing padded rows. Returns (tm, n_pad)."""
    np8 = _round_up(n, 8)
    if np8 <= cap:
        return np8, np8
    best_tm = (cap // 8) * 8
    best_pad = _round_up(np8, best_tm) - np8
    t = best_tm - 8
    lo = max(best_tm // 2, 8)
    while t >= lo and best_pad > 0:
        pad = _round_up(np8, t) - np8
        if pad < best_pad:
            best_tm, best_pad = t, pad
        t -= 8
    return best_tm, np8 + best_pad


def _pick_tile(padded, cap, align=128):
    """Largest multiple of `align` <= cap that exactly divides `padded`
    (`padded` is always a multiple of `align`), so the grid never floor-drops work."""
    if padded <= cap:
        return padded
    t = (cap // align) * align
    while t > align:
        if padded % t == 0:
            return t
        t -= align
    return align


def _vib_kernel_1k(h_ref, w_ref, b_ref, o_ref):
    """Single-K-step path: whole reduction in one tile, no accumulator scratch."""
    acc = jnp.dot(h_ref[...], w_ref[...], preferred_element_type=jnp.float32)
    o_ref[...] = (acc + b_ref[...].astype(jnp.float32)).astype(o_ref.dtype)


def _vib_kernel_multik(h_ref, w_ref, b_ref, o_ref, acc_ref):
    """K-tiled path: f32 VMEM accumulator resident across grid axis 2."""
    k = pl.program_id(2)

    @pl.when(k == 0)
    def _():
        acc_ref[...] = jnp.zeros_like(acc_ref)

    acc_ref[...] += jnp.dot(h_ref[...], w_ref[...],
                            preferred_element_type=jnp.float32)

    @pl.when(k == pl.num_programs(2) - 1)
    def _():
        o_ref[...] = (acc_ref[...] + b_ref[...].astype(jnp.float32)).astype(o_ref.dtype)


def vib_forward(h, weight, bias, *, max_tm=512, max_tn=512, max_tk=2048):
    """VIB forward pass: y = h @ weight.T + bias.

    h:      (N, dim)
    weight: (IB_dim, dim)  -- PyTorch nn.Linear layout
    bias:   (IB_dim,)
    """
    N, dim = h.shape
    out_dim, dim_w = weight.shape
    assert dim == dim_w and bias.shape == (out_dim,)

    # ---- tile selection ------------------------------------------------------
    # Pad feature axes to lane multiples (128) so every load/store is lane-dense.
    dim_p = _round_up(dim, 128)
    out_p = _round_up(out_dim, 128)

    tm, n_pad = _pick_tm(N, max_tm)        # row tile, minimal padding
    tk = _pick_tile(dim_p, max_tk)         # reduction tile, exact divisor
    tn = _pick_tile(out_p, max_tn)         # output-feature tile, exact divisor

    # v7x has 2 TensorCores: if every parallel axis would have a single block,
    # split the row axis so both cores get work (cheap no-op elsewhere).
    if n_pad // tm == 1 and out_p // tn == 1 and n_pad >= 128 and (n_pad // 2) % 8 == 0:
        tm = n_pad // 2

    kt = dim_p // tk
    grid_m = n_pad // tm
    grid_n = out_p // tn

    # ---- wrapper-side layout prep -------------------------------------------
    # One-time transpose to (dim, out_dim): kernel runs a plain (M,K)@(K,N)
    # MXU matmul with no per-tile trans-B handling. Zero padding of the K axis
    # contributes zero to the product; padded output columns are sliced off.
    w_t = weight.T
    if (dim_p, out_p) != (dim, out_dim):
        w_t = jnp.pad(w_t, ((0, dim_p - dim), (0, out_p - out_dim)))
    h_p = h
    if (n_pad, dim_p) != (N, dim):
        h_p = jnp.pad(h, ((0, n_pad - N), (0, dim_p - dim)))
    b2d = bias.reshape(1, out_dim)
    if out_p != out_dim:
        b2d = jnp.pad(b2d, ((0, 0), (0, out_p - out_dim)))

    itemsize = jnp.dtype(h.dtype).itemsize
    cost = pl.CostEstimate(
        flops=2 * N * dim * out_dim,
        transcendentals=0,
        bytes_accessed=itemsize * (N * dim + out_dim * dim + out_dim + N * out_dim),
    )

    # Double-buffered VMEM footprint (+ accumulator scratch on the K-tiled path);
    # explicit limit lifts v5e's 16 MiB default and stays well under v7x's 64 MiB.
    vmem_bytes = 4 * (2 * (tm * tk + tk * tn + tn + tm * tn)
                      + (tm * tn if kt > 1 else 0))
    vmem_limit = int(min(max(vmem_bytes + (8 << 20), 32 << 20), 48 << 20))

    if kt == 1:
        out = pl.pallas_call(
            _vib_kernel_1k,
            out_shape=jax.ShapeDtypeStruct((n_pad, out_p), h.dtype),
            grid_spec=pltpu.PrefetchScalarGridSpec(
                num_scalar_prefetch=0,
                grid=(grid_m, grid_n),
                in_specs=[
                    pl.BlockSpec((tm, tk), lambda i, j: (i, 0)),   # h row tile
                    pl.BlockSpec((tk, tn), lambda i, j: (0, j)),   # W.T col tile
                    pl.BlockSpec((1, tn), lambda i, j: (0, j)),    # bias tile
                ],
                out_specs=pl.BlockSpec((tm, tn), lambda i, j: (i, j)),
            ),
            compiler_params=pltpu.CompilerParams(
                dimension_semantics=("parallel", "parallel"),
                vmem_limit_bytes=vmem_limit,
            ),
            cost_estimate=cost,
        )(h_p, w_t, b2d)
    else:
        out = pl.pallas_call(
            _vib_kernel_multik,
            out_shape=jax.ShapeDtypeStruct((n_pad, out_p), h.dtype),
            grid_spec=pltpu.PrefetchScalarGridSpec(
                num_scalar_prefetch=0,
                grid=(grid_m, grid_n, kt),
                in_specs=[
                    pl.BlockSpec((tm, tk), lambda i, j, k: (i, k)),   # h row/K tile
                    pl.BlockSpec((tk, tn), lambda i, j, k: (k, j)),   # W.T K/col tile
                    pl.BlockSpec((1, tn), lambda i, j, k: (0, j)),    # bias tile
                ],
                out_specs=pl.BlockSpec((tm, tn), lambda i, j, k: (i, j)),
                scratch_shapes=[pltpu.VMEM((tm, tn), jnp.float32)],
            ),
            compiler_params=pltpu.CompilerParams(
                dimension_semantics=("parallel", "parallel", "arbitrary"),
                vmem_limit_bytes=vmem_limit,
            ),
            cost_estimate=cost,
        )(h_p, w_t, b2d)

    if (n_pad, out_p) != (N, out_dim):
        out = out[:N, :out_dim]
    return out


def vib_reference(h, weight, bias):
    return (
        jnp.einsum("nd,od->no", h, weight, precision=lax.Precision.HIGHEST) + bias
    )


def _check(N, dim, IB_dim, seed, atol, rtol, **caps):
    key = jax.random.PRNGKey(seed)
    k_h, k_w, k_b = jax.random.split(key, 3)
    h = jax.random.normal(k_h, (N, dim), dtype=jnp.float32)
    # Synthetic deterministic parameters mimicking nn.Linear shapes.
    weight = jax.random.normal(k_w, (IB_dim, dim), dtype=jnp.float32) * 0.1
    bias = jax.random.normal(k_b, (IB_dim,), dtype=jnp.float32) * 0.1

    out = jax.block_until_ready(vib_forward(h, weight, bias, **caps))
    ref = vib_reference(h, weight, bias)
    assert out.shape == (N, IB_dim)
    assert jnp.allclose(out, ref, atol=atol, rtol=rtol), (
        f"mismatch vs reference for N={N}, dim={dim}, IB_dim={IB_dim}"
    )


if __name__ == "__main__":
    # Typical VIB shape (tiny IB_dim): exercises lane padding of out_dim/dim,
    # single-K path, slicing back to (N, IB_dim).
    _check(N=64, dim=32, IB_dim=16, seed=0, atol=1e-5, rtol=1e-5)
    # Tail-row path: N not a multiple of 8.
    _check(N=20, dim=32, IB_dim=16, seed=0, atol=1e-5, rtol=1e-5)
    # Larger aligned shape: single-K tile, tn tile, v7x two-block row split.
    _check(N=272, dim=1024, IB_dim=256, seed=0, atol=2e-3, rtol=1e-3)
    # Non-divisor caps (previously-buggy case): forces K-tiled accumulator path
    # (dim_p=640, tk=128 -> 5 K steps) and tn tiling (out_p=384, tn=128).
    _check(N=160, dim=640, IB_dim=384, seed=0, atol=2e-3, rtol=1e-3,
           max_tm=64, max_tn=256, max_tk=256)

    print("KERNEL_OK")
</pallas_src>

<mosaic_0001>
module attributes {stable_mosaic.version = 11 : i64} {
  func.func @_vib_kernel_1k(%arg0: i32, %arg1: i32, %arg2: memref<64x128xf32, #tpu.memory_space<vmem>>, %arg3: memref<128x128xf32, #tpu.memory_space<vmem>>, %arg4: memref<1x128xf32, #tpu.memory_space<vmem>>, %arg5: memref<64x128xf32, #tpu.memory_space<vmem>>) attributes {dimension_semantics = [#tpu.dimension_semantics<parallel>, #tpu.dimension_semantics<parallel>], iteration_bounds = array<i64: 1, 1>, scalar_prefetch = 0 : i64, scratch_operands = 0 : i64, tpu.core_type = #tpu.core_type<tc>, window_params = [{transform_indices = @transform_0, window_bounds = array<i64: 64, 128>}, {transform_indices = @transform_1, window_bounds = array<i64: 128, 128>}, {transform_indices = @transform_2, window_bounds = array<i64: 1, 128>}, {transform_indices = @transform_3, window_bounds = array<i64: 64, 128>}]} {
    %c0 = arith.constant 0 : index
    %c0_0 = arith.constant 0 : index
    %0 = vector.load %arg2[%c0, %c0_0] : memref<64x128xf32, #tpu.memory_space<vmem>>, vector<64x128xf32>
    %c0_1 = arith.constant 0 : index
    %c0_2 = arith.constant 0 : index
    %1 = vector.load %arg3[%c0_1, %c0_2] : memref<128x128xf32, #tpu.memory_space<vmem>>, vector<128x128xf32>
    %cst = arith.constant dense<0.000000e+00> : vector<64x128xf32>
    %2 = tpu.matmul %0, %1, %cst {dimension_numbers = #tpu.dot_dimension_numbers<[1], [0], [0], [1], [0, 0, 1, 1], [], []>} : vector<64x128xf32>, vector<128x128xf32>, vector<64x128xf32> -> vector<64x128xf32>
    %c0_3 = arith.constant 0 : index
    %c0_4 = arith.constant 0 : index
    %3 = vector.load %arg4[%c0_3, %c0_4] : memref<1x128xf32, #tpu.memory_space<vmem>>, vector<1x128xf32>
    %4 = vector.broadcast %3 : vector<1x128xf32> to vector<64x128xf32>
    %5 = arith.addf %2, %4 : vector<64x128xf32>
    %c0_5 = arith.constant 0 : index
    %c0_6 = arith.constant 0 : index
    %6 = vector.load %arg5[%c0_5, %c0_6] : memref<64x128xf32, #tpu.memory_space<vmem>>, vector<64x128xf32>
    tpu.vector_store %arg5[%c0_5, %c0_6], %5 {strides = array<i32>} : memref<64x128xf32, #tpu.memory_space<vmem>>, vector<64x128xf32>,
    return
  }
  func.func @transform_0(%arg0: i32, %arg1: i32) -> (i32, i32) {
    %c0_i32 = arith.constant 0 : i32
    %c0_i32_0 = arith.constant 0 : i32
    return %arg0, %c0_i32 : i32, i32
  }
  func.func @transform_1(%arg0: i32, %arg1: i32) -> (i32, i32) {
    %c0_i32 = arith.constant 0 : i32
    %c0_i32_0 = arith.constant 0 : i32
    return %c0_i32, %arg1 : i32, i32
  }
  func.func @transform_2(%arg0: i32, %arg1: i32) -> (i32, i32) {
    %c0_i32 = arith.constant 0 : i32
    %c0_i32_0 = arith.constant 0 : i32
    return %c0_i32, %arg1 : i32, i32
  }
  func.func @transform_3(%arg0: i32, %arg1: i32) -> (i32, i32) {
    %c0_i32 = arith.constant 0 : i32
    return %arg0, %arg1 : i32, i32
  }
}

</mosaic_0001>

<bundles_post_ra>
// kernel: tpu_custom_call.1
= control target key start
LH: loop header
LB: loop body
LE: loop exit
PB: predicated region body
PF: predicated region fallthrough
CT: control target
= control target key end

     0   :  { %8 = vsyncpa [#allocation3], 0  ;;  %s322_s0 = inlined_call_operand.hbm [shape: f32[64,128], index: 0, kind: input, shape index: {}]   ;;  %s323_s1 = inlined_call_operand.hbm [shape: f32[128,128], index: 1, kind: input, shape index: {}]   ;;  %s324_s2 = inlined_call_operand.vmem [shape: f32[1,128], index: 2, kind: input, shape index: {}]   ;;  %s325_s3 = inlined_call_operand.hbm [shape: f32[64,128], index: 3, kind: output, shape index: {}]  }
   0x1   :  { %9 = vsyncpa [#allocation6], 0 }
   0x2   :  { %10 = vsyncpa [#allocation4], 0  ;;  %s15_s14 = sshll.u32 %s322_s0, 4  ;;  %s276_s15 = smov [#allocation2]   ;;  %s16_s14 = int_to_ptr.hbm [resolvable:$true] %s15_s14 }
   0x3   :  { %s17_s16 = sshll.u32 %s276_s15, 4  ;;  %s28_s19 = sshll.u32 %s323_s1, 4  ;;  %s18_s16 = int_to_ptr.vmem [resolvable:$true] %s17_s16  ;;  %s29_s19 = int_to_ptr.hbm [resolvable:$true] %s28_s19 }
   0x4   :  { %s277_s20 = smov 128   ;;  %s278_s21 = smov 8  }
   0x5   :  { %23 = dma.hbm_to_vmem [thread:$0]  %s16_s14, 1024, %s18_s16, [#allocation3], %s277_s20, %s277_s20, %s278_s21  }
   0x6   :  { %s279_s22 = smov [#allocation5]  }
   0x7   :  { %s30_s23 = sshll.u32 %s279_s22, 4  ;;  %s31_s23 = int_to_ptr.vmem [resolvable:$true] %s30_s23 }
   0x8   :  { %36 = dma.hbm_to_vmem [thread:$0]  %s29_s19, 2048, %s31_s23, [#allocation6], %s277_s20, %s277_s20, %s278_s21  }
   0x9   :  { %270 = dma.done.wait [#allocation3], 1024  }
   0xa   :  { %271 = vsyncadd [#allocation3], 4294966272 }
   0xb   :  { %272 = dma.done.wait [#allocation6], 2048  }
   0xc   :  { %273 = vsyncadd [#allocation6], 4294965248  ;;  %v70_v0 = vld [vmem:[#allocation5 + $0x78] sm:$0xff]  ;;  %v69_v1 = vld [vmem:[#allocation5 + $0x70] sm:$0xff]  ;;  %s280_s24 = smov [#allocation7]   ;;  %s130_s27 = sshll.u32 %s325_s3, 4  ;;  %s131_s27 = int_to_ptr.hbm [resolvable:$true] %s130_s27 }
   0xd   :  { %145 = vmatpush.msra.mxu2 %v70_v0  ;;  %146 = vmatpush.msra.mxu3 %v70_v0  ;;  %v68_v2 = vld [vmem:[#allocation5 + $0x68] sm:$0xff]  ;;  %v67_v3 = vld [vmem:[#allocation5 + $0x60] sm:$0xff]  ;;  %v66_v4 = vld [vmem:[#allocation5 + $0x58] sm:$0xff]  ;;  %s128_s25 = sshll.u32 %s280_s24, 4  ;;  %s129_s25 = int_to_ptr.vmem [resolvable:$true] %s128_s25 }
   0xe   :  { %75 = vmatpush.msra.mxu0 %v70_v0  ;;  %144 = vmatpush.msra.mxu1 %v70_v0  ;;  %v65_v5 = vld [vmem:[#allocation5 + $0x50] sm:$0xff]  ;;  %v64_v6 = vld [vmem:[#allocation5 + $0x48] sm:$0xff]  ;;  %v63_v7 = vld [vmem:[#allocation5 + $0x40] sm:$0xff] }
   0xf   :  { %148 = vmatpush.msra.mxu2 %v69_v1  ;;  %149 = vmatpush.msra.mxu3 %v69_v1  ;;  %v62_v8 = vld [vmem:[#allocation5 + $0x38] sm:$0xff]  ;;  %v61_v9 = vld [vmem:[#allocation5 + $0x30] sm:$0xff]  ;;  %v60_v10 = vld [vmem:[#allocation5 + $0x28] sm:$0xff] }
  0x10   :  { %76 = vmatpush.msra.mxu0 %v69_v1  ;;  %147 = vmatpush.msra.mxu1 %v69_v1  ;;  %v59_v11 = vld [vmem:[#allocation5 + $0x20] sm:$0xff]  ;;  %v58_v12 = vld [vmem:[#allocation5 + $0x18] sm:$0xff]  ;;  %v57_v13 = vld [vmem:[#allocation5 + $0x10] sm:$0xff] }
  0x11   :  { %151 = vmatpush.msra.mxu2 %v68_v2  ;;  %152 = vmatpush.msra.mxu3 %v68_v2  ;;  %v56_v14 = vld [vmem:[#allocation5 + $0x8] sm:$0xff]  ;;  %v55_v15 = vld [vmem:[#allocation5] sm:$0xff]  ;;  %v53_v17 = vld [vmem:[#allocation2 + $0x30] sm:$0xff] }
  0x12   :  { %77 = vmatpush.msra.mxu0 %v68_v2  ;;  %150 = vmatpush.msra.mxu1 %v68_v2  ;;  %v51_v16 = vld [vmem:[#allocation2 + $0x20] sm:$0xff]  ;;  %v49_v19 = vld [vmem:[#allocation2 + $0x10] sm:$0xff]  ;;  %v52_v20 = vld [vmem:[#allocation2 + $0x28] sm:$0xff] }
  0x13   :  { %154 = vmatpush.msra.mxu2 %v67_v3  ;;  %155 = vmatpush.msra.mxu3 %v67_v3  ;;  %v47_v18 = vld [vmem:[#allocation2] sm:$0xff]  ;;  %v54_v21 = vld [vmem:[#allocation2 + $0x38] sm:$0xff]  ;;  %v48_v22 = vld [vmem:[#allocation2 + $0x8] sm:$0xff] }
  0x14   :  { %78 = vmatpush.msra.mxu0 %v67_v3  ;;  %153 = vmatpush.msra.mxu1 %v67_v3  ;;  %v50_v23 = vld [vmem:[#allocation2 + $0x18] sm:$0xff]  ;;  %v197_v24 = vld [vmem:[%s324_s2] ss:$0 sm:$0xff] }
  0x15   :  { %157 = vmatpush.msra.mxu2 %v66_v4  ;;  %158 = vmatpush.msra.mxu3 %v66_v4 }
  0x16   :  { %79 = vmatpush.msra.mxu0 %v66_v4  ;;  %156 = vmatpush.msra.mxu1 %v66_v4 }
  0x17   :  { %160 = vmatpush.msra.mxu2 %v65_v5  ;;  %161 = vmatpush.msra.mxu3 %v65_v5 }
  0x18   :  { %80 = vmatpush.msra.mxu0 %v65_v5  ;;  %159 = vmatpush.msra.mxu1 %v65_v5 }
  0x19   :  { %163 = vmatpush.msra.mxu2 %v64_v6  ;;  %164 = vmatpush.msra.mxu3 %v64_v6 }
  0x1a   :  { %81 = vmatpush.msra.mxu0 %v64_v6  ;;  %162 = vmatpush.msra.mxu1 %v64_v6 }
  0x1b   :  { %166 = vmatpush.msra.mxu2 %v63_v7  ;;  %167 = vmatpush.msra.mxu3 %v63_v7 }
  0x1c   :  { %82 = vmatpush.msra.mxu0 %v63_v7  ;;  %165 = vmatpush.msra.mxu1 %v63_v7 }
  0x1d   :  { %169 = vmatpush.msra.mxu2 %v62_v8  ;;  %170 = vmatpush.msra.mxu3 %v62_v8 }
  0x1e   :  { %83 = vmatpush.msra.mxu0 %v62_v8  ;;  %168 = vmatpush.msra.mxu1 %v62_v8 }
  0x1f   :  { %172 = vmatpush.msra.mxu2 %v61_v9  ;;  %173 = vmatpush.msra.mxu3 %v61_v9 }
  0x20   :  { %84 = vmatpush.msra.mxu0 %v61_v9  ;;  %171 = vmatpush.msra.mxu1 %v61_v9 }
  0x21   :  { %175 = vmatpush.msra.mxu2 %v60_v10  ;;  %176 = vmatpush.msra.mxu3 %v60_v10 }
  0x22   :  { %85 = vmatpush.msra.mxu0 %v60_v10  ;;  %174 = vmatpush.msra.mxu1 %v60_v10 }
  0x23   :  { %178 = vmatpush.msra.mxu2 %v59_v11  ;;  %179 = vmatpush.msra.mxu3 %v59_v11 }
  0x24   :  { %86 = vmatpush.msra.mxu0 %v59_v11  ;;  %177 = vmatpush.msra.mxu1 %v59_v11 }
  0x25   :  { %181 = vmatpush.msra.mxu2 %v58_v12  ;;  %182 = vmatpush.msra.mxu3 %v58_v12 }
  0x26   :  { %87 = vmatpush.msra.mxu0 %v58_v12  ;;  %180 = vmatpush.msra.mxu1 %v58_v12 }
  0x27   :  { %184 = vmatpush.msra.mxu2 %v57_v13  ;;  %185 = vmatpush.msra.mxu3 %v57_v13 }
  0x28   :  { %88 = vmatpush.msra.mxu0 %v57_v13  ;;  %183 = vmatpush.msra.mxu1 %v57_v13 }
  0x29   :  { %187 = vmatpush.msra.mxu2 %v56_v14  ;;  %188 = vmatpush.msra.mxu3 %v56_v14 }
  0x2a   :  { %89 = vmatpush.msra.mxu0 %v56_v14  ;;  %186 = vmatpush.msra.mxu1 %v56_v14 }
  0x2b   :  { %190 = vmatpush.msra.mxu2 %v55_v15  ;;  %191 = vmatpush.msra.mxu3 %v55_v15 }
  0x2c   :  { %103 = vmatmul.f32.vlgmr.msra.gmra.mxu2 %v51_v16  ;;  %109 = vmatmul.f32.vlgmr.msra.gmra.mxu3 %v53_v17 }
  0x2d   :  { %90 = vmatpush.msra.mxu0 %v55_v15  ;;  %189 = vmatpush.msra.mxu1 %v55_v15 }
  0x2e   :  { %91 = vmatmul.f32.vlgmr.msra.gmra.mxu0 %v47_v18  ;;  %97 = vmatmul.f32.vlgmr.msra.gmra.mxu1 %v49_v19 }
  0x34   :  { %106 = vmatmul.f32.gmra.mxu2 %v52_v20  ;;  %112 = vmatmul.f32.gmra.mxu3 %v54_v21 }
  0x36   :  { %94 = vmatmul.f32.gmra.mxu0 %v48_v22  ;;  %100 = vmatmul.f32.gmra.mxu1 %v50_v23 }
  0xab   :  { %v92_v25 = vpop.f32.mrf.mxu0  ;;  %v98_v26 = vpop.f32.mrf.mxu1 }
  0xac   :  { %v93_v27 = vadd.f32 %v197_v24, %v92_v25  ;;  %v99_v28 = vadd.f32 %v197_v24, %v98_v26 }
  0xae   :  { %116 = vst [vmem:[#allocation7] sm:$0xff] %v93_v27 }
  0xaf   :  { %118 = vst [vmem:[#allocation7 + $0x10] sm:$0xff] %v99_v28  ;;  %v104_v29 = vpop.f32.mrf.mxu2  ;;  %v110_v30 = vpop.f32.mrf.mxu3 }
  0xb0   :  { %v105_v31 = vadd.f32 %v197_v24, %v104_v29  ;;  %v111_v32 = vadd.f32 %v197_v24, %v110_v30 }
  0xb2   :  { %120 = vst [vmem:[#allocation7 + $0x20] sm:$0xff] %v105_v31 }
  0xb3   :  { %122 = vst [vmem:[#allocation7 + $0x30] sm:$0xff] %v111_v32  ;;  %v95_v33 = vpop.f32.mrf.mxu0  ;;  %v101_v34 = vpop.f32.mrf.mxu1 }
  0xb4   :  { %v96_v35 = vadd.f32 %v197_v24, %v95_v33  ;;  %v102_v36 = vadd.f32 %v197_v24, %v101_v34 }
  0xb6   :  { %117 = vst [vmem:[#allocation7 + $0x8] sm:$0xff] %v96_v35 }
  0xb7   :  { %119 = vst [vmem:[#allocation7 + $0x18] sm:$0xff] %v102_v36  ;;  %v107_v37 = vpop.f32.mrf.mxu2  ;;  %v113_v38 = vpop.f32.mrf.mxu3 }
  0xb8   :  { %v108_v39 = vadd.f32 %v197_v24, %v107_v37  ;;  %v114_v40 = vadd.f32 %v197_v24, %v113_v38 }
  0xba   :  { %121 = vst [vmem:[#allocation7 + $0x28] sm:$0xff] %v108_v39 }
  0xbb   :  { %123 = vst [vmem:[#allocation7 + $0x38] sm:$0xff] %v114_v40 }
  0xbc   :  { %136 = dma.vmem_to_hbm [thread:$0]  %s129_s25, 1024, %s131_s27, [#allocation4], %s277_s20, %s277_s20, %s278_s21  }
  0xbd   :  { %274 = dma.done.wait [#allocation4], 1024  }
  0xbe   :  { %275 = vsyncadd [#allocation4], 4294966272 }
  0xbf   :  { %141 = vsyncpa [#allocation3], 1 }
  0xc0   :  { %142 = vsyncpa [#allocation6], 1 }
  0xc1   :  { %143 = vsyncpa [#allocation4], 1 }

</bundles_post_ra>
